<compile_context>
chip_gen: v7x
topology: tpu7x:2x2x1
jax: 0.10.0
libtpu: 0.0.40
codegen_flags: <defaults>
</compile_context>

<pallas_src>
import functools
import math

import jax
import jax.numpy as jnp
from jax.experimental import pallas as pl
from jax.experimental.pallas import tpu as pltpu


# ---------------------------------------------------------------------------
# helpers
# ---------------------------------------------------------------------------
def _round_up(a: int, b: int) -> int:
    return (a + b - 1) // b * b


def _sublane_multiple(dtype) -> int:
    # Minimum second-to-last-dim tile per dtype: f32 -> 8, bf16 -> 16, int8/fp8 -> 32.
    return {4: 8, 2: 16, 1: 32}.get(jnp.dtype(dtype).itemsize, 8)


def _choose_block(dim: int, target: int, align: int):
    """Pick a tile size for one dimension. Returns (block, padded_dim).

    Preference order:
      (a) full-dimension block when the dim is small (exempt from the (8,128) rule, no padding),
      (b) an aligned block that divides the dim exactly (no padding copy),
      (c) last resort: zero-pad the dim up to a multiple of the target tile (numerically safe).
    """
    target = max(align, (target // align) * align)
    if dim <= target:
        return dim, dim
    for cand in range(target, align - 1, -align):
        if dim % cand == 0:
            return cand, dim
    return target, _round_up(dim, target)


_SQRT_2_OVER_PI = math.sqrt(2.0 / math.pi)


def _gelu_new(y):
    # GPT-2 'gelu_new' (tanh approximation), evaluated in the accumulator dtype (f32 in-kernel).
    return 0.5 * y * (1.0 + jnp.tanh(_SQRT_2_OVER_PI * (y + 0.044715 * (y * y * y))))


# ---------------------------------------------------------------------------
# Conv1D kernels
# ---------------------------------------------------------------------------
def _conv1d_kernel_direct(x_ref, w_ref, b_ref, o_ref, *, activation):
    """float32 output: accumulate straight into the VMEM-resident output block (no scratch)."""
    k = pl.program_id(2)

    @pl.when(k == 0)
    def _():
        # Fuse the bias into the accumulator init instead of a final tm x tn add pass.
        o_ref[...] = jnp.broadcast_to(b_ref[...].astype(jnp.float32), o_ref.shape)

    o_ref[...] += jnp.dot(x_ref[...], w_ref[...], preferred_element_type=jnp.float32)

    if activation == "gelu_new":

        @pl.when(k == pl.num_programs(2) - 1)
        def _():
            o_ref[...] = _gelu_new(o_ref[...])


def _conv1d_kernel_acc(x_ref, w_ref, b_ref, o_ref, acc_ref, *, activation):
    """Low-precision output: f32 VMEM scratch accumulator, cast on the last K step."""
    k = pl.program_id(2)

    @pl.when(k == 0)
    def _():
        acc_ref[...] = jnp.broadcast_to(b_ref[...].astype(jnp.float32), acc_ref.shape)

    acc_ref[...] += jnp.dot(x_ref[...], w_ref[...], preferred_element_type=jnp.float32)

    @pl.when(k == pl.num_programs(2) - 1)
    def _():
        y = acc_ref[...]
        if activation == "gelu_new":
            y = _gelu_new(y)
        o_ref[...] = y.astype(o_ref.dtype)


def conv1d(x, weight, bias, *, activation=None,
           tm_target=256, tn_target=512, tk_target=None, out_dtype=None):
    """HF Conv1D forward (x @ weight + bias) as a tiled Pallas TPU matmul, optional fused GELU."""
    nx = x.shape[-1]
    nf = weight.shape[1]
    assert weight.shape[0] == nx and bias.shape == (nf,)
    size_out = x.shape[:-1] + (nf,)

    x2 = x.reshape(-1, nx)
    M = x2.shape[0]
    out_dtype = jnp.dtype(x.dtype) if out_dtype is None else jnp.dtype(out_dtype)

    # dtype-dependent minimum sublane tile for the row dim; lane dims need multiples of 128.
    align_m = _sublane_multiple(x.dtype)
    align_k = 128
    align_n = 128
    if tk_target is None:
        tk_target = 1024 if jnp.dtype(x.dtype).itemsize <= 2 else 512  # deeper K tiles for bf16

    bm, Mp = _choose_block(M, tm_target, align_m)
    bk, Kp = _choose_block(nx, tk_target, align_k)
    bn, Np = _choose_block(nf, tn_target, align_n)

    # Keep at least two row blocks when it costs nothing, so v7x's two TensorCores both get work.
    if bm == M and M % (2 * align_m) == 0:
        bm = M // 2

    # Pad only when the chosen tiles do not evenly divide the true dims (zero-pad keeps the
    # K reduction exact); for aligned GPT-2 shapes this is a no-op (no extra HBM round trip).
    x_p = x2 if (Mp == M and Kp == nx) else jnp.pad(x2, ((0, Mp - M), (0, Kp - nx)))
    w_p = weight if (Kp == nx and Np == nf) else jnp.pad(weight, ((0, Kp - nx), (0, Np - nf)))
    b2 = bias.reshape(1, nf)
    b_p = b2 if Np == nf else jnp.pad(b2, ((0, 0), (0, Np - nf)))

    grid = (Mp // bm, Np // bn, Kp // bk)

    direct = out_dtype == jnp.float32
    if direct:
        kernel = functools.partial(_conv1d_kernel_direct, activation=activation)
        scratch_shapes = []
    else:
        kernel = functools.partial(_conv1d_kernel_acc, activation=activation)
        scratch_shapes = [pltpu.VMEM((bm, bn), jnp.float32)]

    # VMEM budget: double-buffered input/output tiles + accumulator + headroom, clamped so the
    # request also fits v7x's 64 MiB physical VMEM (and raises v5e's 16 MiB default scoped limit).
    vmem_bytes = (
        2 * (bm * bk * x_p.dtype.itemsize
             + bk * bn * w_p.dtype.itemsize
             + bn * b_p.dtype.itemsize)
        + 2 * bm * bn * out_dtype.itemsize
        + (0 if direct else bm * bn * 4)
    )
    vmem_limit = int(min(max(32 << 20, 2 * vmem_bytes), 56 << 20))

    out_p = pl.pallas_call(
        kernel,
        out_shape=jax.ShapeDtypeStruct((Mp, Np), out_dtype),
        grid_spec=pltpu.PrefetchScalarGridSpec(
            num_scalar_prefetch=0,
            grid=grid,
            in_specs=[
                pl.BlockSpec((bm, bk), lambda i, j, k: (i, k)),   # activations tile
                pl.BlockSpec((bk, bn), lambda i, j, k: (k, j)),   # weight tile
                pl.BlockSpec((1, bn), lambda i, j, k: (0, j)),    # bias tile
            ],
            out_specs=pl.BlockSpec((bm, bn), lambda i, j, k: (i, j)),
            scratch_shapes=scratch_shapes,
        ),
        compiler_params=pltpu.CompilerParams(
            dimension_semantics=("parallel", "parallel", "arbitrary"),
            vmem_limit_bytes=vmem_limit,
        ),
    )(x_p, w_p, b_p)

    out = out_p if (Mp == M and Np == nf) else out_p[:M, :nf]
    return out.reshape(size_out)


def _dense_ref(x, w, b, activation=None):
    """Pure-JAX reference for the Conv1D (+ optional fused GELU) path."""
    y = x @ w + b
    if activation == "gelu_new":
        y = _gelu_new(y)
    return y


# ---------------------------------------------------------------------------
# SkeletonGPT2Layer forward: GPT2Attention -> GPT2MLP -> LayerNorm (dropout = identity)
# ---------------------------------------------------------------------------
def gpt2_skeleton_layer(x, params, *, num_heads, ln_eps=1e-5, dense=None):
    if dense is None:
        dense = conv1d
    B, S, E = x.shape
    hd = E // num_heads

    # --- GPT2Attention ---
    qkv = dense(x, params["c_attn_w"], params["c_attn_b"])          # (B, S, 3E) via Pallas matmul
    q, k, v = jnp.split(qkv, 3, axis=-1)

    def split_heads(t):
        return t.reshape(B, S, num_heads, hd).transpose(0, 2, 1, 3)  # (B, H, S, hd)

    q, k, v = split_heads(q), split_heads(k), split_heads(v)

    # TODO(synk): the attention softmax core (S=8) and the final LayerNorm remain plain-JAX glue;
    # the four Conv1D matmuls (the FLOP-dominant work) all run in the Pallas kernel. A Pallas
    # flash-attention kernel would replace this block for long sequences.
    attn = jnp.einsum("bhqd,bhkd->bhqk", q, k) / jnp.asarray(math.sqrt(hd), q.dtype)
    causal = jnp.tril(jnp.ones((S, S), dtype=bool))
    attn = jnp.where(causal, attn, jnp.finfo(attn.dtype).min)
    attn = jax.nn.softmax(attn, axis=-1)
    ctx = jnp.einsum("bhqk,bhkd->bhqd", attn, v)
    ctx = ctx.transpose(0, 2, 1, 3).reshape(B, S, E)
    attn_out = dense(ctx, params["attn_proj_w"], params["attn_proj_b"])   # c_proj (attn)

    # --- GPT2MLP ('gelu_new' fused into the c_fc kernel epilogue) ---
    h = dense(attn_out, params["c_fc_w"], params["c_fc_b"], activation="gelu_new")
    h = dense(h, params["mlp_proj_w"], params["mlp_proj_b"])

    # --- final LayerNorm (ln_f) ---
    mu = jnp.mean(h, axis=-1, keepdims=True)
    var = jnp.mean(jnp.square(h - mu), axis=-1, keepdims=True)
    return (h - mu) * jax.lax.rsqrt(var + ln_eps) * params["ln_g"] + params["ln_b"]


# ---------------------------------------------------------------------------
# demo / self-check
# ---------------------------------------------------------------------------
if __name__ == "__main__":
    key = jax.random.PRNGKey(0)
    k_x, k_w, k_xm, k_wm, k_bm = jax.random.split(key, 5)

    # --- standalone Conv1D checks (small shapes, forced multi-step grids) ---
    xm = jax.random.normal(k_xm, (32, 256), dtype=jnp.float32)
    wm = 0.02 * jax.random.normal(k_wm, (256, 256), dtype=jnp.float32)
    bv = 0.1 * jax.random.normal(k_bm, (256,), dtype=jnp.float32)

    # f32 path: bias-fused init + direct accumulation into the output block, grid (2, 2, 2).
    y = jax.block_until_ready(conv1d(xm, wm, bv, tm_target=16, tn_target=128, tk_target=128))
    assert jnp.allclose(y, xm @ wm + bv, atol=1e-5, rtol=1e-5), "f32 conv1d mismatch"

    # Ragged dims: exercises the zero-padded fallback (padding only when unavoidable).
    xr = jax.random.normal(k_xm, (30, 200), dtype=jnp.float32)
    wr = 0.02 * jax.random.normal(k_wm, (200, 72), dtype=jnp.float32)
    br = 0.1 * jax.random.normal(k_bm, (72,), dtype=jnp.float32)
    yr = jax.block_until_ready(conv1d(xr, wr, br, tm_target=16, tn_target=128, tk_target=128))
    assert jnp.allclose(yr, xr @ wr + br, atol=1e-5, rtol=1e-5), "ragged conv1d mismatch"

    # bf16 operands (bf16 MXU path, halved HBM traffic), f32 scratch accumulation, 16-row tiles.
    xb, wb, bb = xm.astype(jnp.bfloat16), wm.astype(jnp.bfloat16), bv.astype(jnp.bfloat16)
    yb = jax.block_until_ready(conv1d(xb, wb, bb, tm_target=32, tn_target=128, tk_target=128))
    yb_ref = xb.astype(jnp.float32) @ wb.astype(jnp.float32) + bb.astype(jnp.float32)
    assert jnp.allclose(yb.astype(jnp.float32), yb_ref, atol=2e-2, rtol=2e-2), "bf16 conv1d mismatch"

    # --- full SkeletonGPT2Layer forward at small GPT-2-like shapes ---
    batch, seq, hidden, heads, inter = 2, 8, 32, 4, 128
    x = jax.random.normal(k_x, (batch, seq, hidden), dtype=jnp.float32)
    k1, k2, k3, k4 = jax.random.split(k_w, 4)
    params = {
        "c_attn_w": 0.02 * jax.random.normal(k1, (hidden, 3 * hidden), dtype=jnp.float32),
        "c_attn_b": jnp.zeros((3 * hidden,), jnp.float32),
        "attn_proj_w": 0.02 * jax.random.normal(k2, (hidden, hidden), dtype=jnp.float32),
        "attn_proj_b": jnp.zeros((hidden,), jnp.float32),
        "c_fc_w": 0.02 * jax.random.normal(k3, (hidden, inter), dtype=jnp.float32),
        "c_fc_b": jnp.zeros((inter,), jnp.float32),
        "mlp_proj_w": 0.02 * jax.random.normal(k4, (inter, hidden), dtype=jnp.float32),
        "mlp_proj_b": jnp.zeros((hidden,), jnp.float32),
        "ln_g": jnp.ones((hidden,), jnp.float32),
        "ln_b": jnp.zeros((hidden,), jnp.float32),
    }

    out = jax.block_until_ready(gpt2_skeleton_layer(x, params, num_heads=heads))
    ref = gpt2_skeleton_layer(x, params, num_heads=heads, dense=_dense_ref)
    assert out.shape == (batch, seq, hidden)
    assert jnp.allclose(out, ref, atol=1e-4, rtol=1e-4), "layer forward mismatch"

    print("KERNEL_OK")
</pallas_src>

<mosaic_0001>
module attributes {stable_mosaic.version = 11 : i64} {
  func.func @_conv1d_kernel_direct(%arg0: i32, %arg1: i32, %arg2: i32, %arg3: memref<16x128xf32, #tpu.memory_space<vmem>>, %arg4: memref<128x128xf32, #tpu.memory_space<vmem>>, %arg5: memref<1x128xf32, #tpu.memory_space<vmem>>, %arg6: memref<16x128xf32, #tpu.memory_space<vmem>>) attributes {dimension_semantics = [#tpu.dimension_semantics<parallel>, #tpu.dimension_semantics<parallel>, #tpu.dimension_semantics<arbitrary>], iteration_bounds = array<i64: 2, 2, 2>, scalar_prefetch = 0 : i64, scratch_operands = 0 : i64, tpu.core_type = #tpu.core_type<tc>, window_params = [{transform_indices = @transform_0, window_bounds = array<i64: 16, 128>}, {transform_indices = @transform_1, window_bounds = array<i64: 128, 128>}, {transform_indices = @transform_2, window_bounds = array<i64: 1, 128>}, {transform_indices = @transform_3, window_bounds = array<i64: 16, 128>}]} {
    %c0_i32 = arith.constant 0 : i32
    %0 = arith.cmpi eq, %arg2, %c0_i32 : i32
    %1 = arith.extui %0 : i1 to i32
    %c0_i32_0 = arith.constant 0 : i32
    %2 = arith.cmpi ne, %1, %c0_i32_0 : i32
    scf.if %2 {
      %c0_8 = arith.constant 0 : index
      %c0_9 = arith.constant 0 : index
      %9 = vector.load %arg5[%c0_8, %c0_9] : memref<1x128xf32, #tpu.memory_space<vmem>>, vector<1x128xf32>
      %10 = vector.shape_cast %9 : vector<1x128xf32> to vector<1x128xf32>
      %11 = vector.broadcast %10 : vector<1x128xf32> to vector<16x128xf32>
      %c0_10 = arith.constant 0 : index
      %c0_11 = arith.constant 0 : index
      %12 = vector.load %arg6[%c0_10, %c0_11] : memref<16x128xf32, #tpu.memory_space<vmem>>, vector<16x128xf32>
      tpu.vector_store %arg6[%c0_10, %c0_11], %11 {strides = array<i32>} : memref<16x128xf32, #tpu.memory_space<vmem>>, vector<16x128xf32>,
    } else {
    }
    %c0 = arith.constant 0 : index
    %c0_1 = arith.constant 0 : index
    %3 = vector.load %arg6[%c0, %c0_1] : memref<16x128xf32, #tpu.memory_space<vmem>>, vector<16x128xf32>
    %c0_2 = arith.constant 0 : index
    %c0_3 = arith.constant 0 : index
    %4 = vector.load %arg3[%c0_2, %c0_3] : memref<16x128xf32, #tpu.memory_space<vmem>>, vector<16x128xf32>
    %c0_4 = arith.constant 0 : index
    %c0_5 = arith.constant 0 : index
    %5 = vector.load %arg4[%c0_4, %c0_5] : memref<128x128xf32, #tpu.memory_space<vmem>>, vector<128x128xf32>
    %cst = arith.constant dense<0.000000e+00> : vector<16x128xf32>
    %6 = tpu.matmul %4, %5, %cst {dimension_numbers = #tpu.dot_dimension_numbers<[1], [0], [0], [1], [0, 0, 1, 1], [], []>} : vector<16x128xf32>, vector<128x128xf32>, vector<16x128xf32> -> vector<16x128xf32>
    %7 = arith.addf %3, %6 : vector<16x128xf32>
    %c0_6 = arith.constant 0 : index
    %c0_7 = arith.constant 0 : index
    %8 = vector.load %arg6[%c0_6, %c0_7] : memref<16x128xf32, #tpu.memory_space<vmem>>, vector<16x128xf32>
    tpu.vector_store %arg6[%c0_6, %c0_7], %7 {strides = array<i32>} : memref<16x128xf32, #tpu.memory_space<vmem>>, vector<16x128xf32>,
    return
  }
  func.func @transform_0(%arg0: i32, %arg1: i32, %arg2: i32) -> (i32, i32) {
    %c0_i32 = arith.constant 0 : i32
    return %arg0, %arg2 : i32, i32
  }
  func.func @transform_1(%arg0: i32, %arg1: i32, %arg2: i32) -> (i32, i32) {
    %c0_i32 = arith.constant 0 : i32
    return %arg2, %arg1 : i32, i32
  }
  func.func @transform_2(%arg0: i32, %arg1: i32, %arg2: i32) -> (i32, i32) {
    %c0_i32 = arith.constant 0 : i32
    %c0_i32_0 = arith.constant 0 : i32
    return %c0_i32, %arg1 : i32, i32
  }
  func.func @transform_3(%arg0: i32, %arg1: i32, %arg2: i32) -> (i32, i32) {
    %c0_i32 = arith.constant 0 : i32
    return %arg0, %arg1 : i32, i32
  }
}

</mosaic_0001>

<bundles_post_ra>
// kernel: tpu_custom_call.1
= control target key start
LH: loop header
LB: loop body
LE: loop exit
PB: predicated region body
PF: predicated region fallthrough
CT: control target
= control target key end

     0   :  { %s1480_s0 = inlined_call_operand.hbm [shape: f32[32,256], index: 0, kind: input, shape index: {}]   ;;  %s1481_s1 = inlined_call_operand.hbm [shape: f32[256,256], index: 1, kind: input, shape index: {}]   ;;  %s1482_s2 = inlined_call_operand.vmem [shape: f32[1,256], index: 2, kind: input, shape index: {}]   ;;  %s1483_s3 = inlined_call_operand.hbm [shape: f32[32,256], index: 3, kind: output, shape index: {}]  }
   0x1   :  { %1502 = sst [smem:[#allocation18_spill]] %s1480_s0 }
   0x2   :  { %1503 = sst [smem:[#allocation19_spill]] %s1483_s3 }
   0x3   :  { %8 = vsyncpa [#allocation3], 0 }
   0x4   :  { %10 = vsyncpa [#allocation3 + $0x1], 0 }
   0x5   :  { %11 = vsyncpa [#allocation6], 0 }
   0x6   :  { %13 = vsyncpa [#allocation6 + $0x1], 0 }
   0x7   :  { %14 = vsyncpa [#allocation4], 0 }
   0x8   :  { %16 = vsyncpa [#allocation4 + $0x1], 0  ;;  %s1053_s12 = smov 0   ;;  %s1055_s13 = smov 0  }
   0x9   :  { %s1057_s14 = smov 0   ;;  %s1059_s15 = smov 0  }
   0xa   :  { %s1061_s16 = smov 0   ;;  %s1063_s17 = smov 0  }
   0xb   :  { %s1065_s18 = smov 0   ;;  %s1067_s19 = smov 0  }
   0xc   :  { %s1069_s20 = smov 0   ;;  %s1071_s21 = smov 0  }
   0xd   :  { %s1073_s22 = smov 0   ;;  %s1075_s23 = smov 0  }
   0xe   :  { %s1077_s24 = smov 0   ;;  %s1079_s25 = smov 0  }
   0xf   :  { %s1081_s26 = smov 0   ;;  %s1083_s27 = smov 0  }
  0x10 LB: > { %1504 = sst [smem:[#allocation11_spill]] %s998_s21  ;;  %s34_s28 = sadd.s32 1, %s1010_s24  ;;  %s1022_s27 = sphi %s1083_s27, %s22_s27   ;;  %s1018_s26 = sphi %s1081_s26, %s1545_s26   ;;  %s1014_s25 = sphi %s1079_s25, %s1558_s25   ;;  %s1010_s24 = sphi %s1077_s24, %s1557_s24   ;;  %s1006_s23 = sphi %s1075_s23, %s1542_s23   ;;  %s1002_s22 = sphi %s1073_s22, %s1556_s22   ;;  %s998_s21 = sphi %s1071_s21, %s1555_s21   ;;  %s994_s20 = sphi %s1069_s20, %s1554_s20   ;;  %s990_s19 = sphi %s1067_s19, %s1553_s19   ;;  %s986_s18 = sphi %s1065_s18, %s1552_s18   ;;  %s982_s17 = sphi %s1063_s17, %s1551_s17   ;;  %s978_s16 = sphi %s1061_s16, %s1550_s16   ;;  %s974_s15 = sphi %s1059_s15, %s1549_s15   ;;  %s970_s14 = sphi %s1057_s14, %s1548_s14   ;;  %s966_s13 = sphi %s1055_s13, %s1547_s13   ;;  %s962_s12 = sphi %s1053_s12, %s1546_s12  }
  0x11   : > { %1505 = sst [smem:[#allocation12_spill]] %s1006_s23  ;;  %s1484_s29 = sadd.s32 4294967295, %s1022_s27  }
  0x12   : > { %1506 = sst [smem:[#allocation13_spill]] %s1018_s26  ;;  %p1133_p0 = scmp.ge.s32.totalorder %s34_s28, 2 }
  0x13   : > { %p57_p1 = scmp.ne.s32.totalorder %s994_s20, %s990_s19  ;;  %p1488_p2 = scmp.eq.s32.totalorder %s1022_s27, 0 }
  0x14   : > { %s1560_s28 = smov (%p1133_p0, %s34_s28), 0  ;;  %p63_p3 = scmp.ne.s32.totalorder %s990_s19, %s986_s18 }
  0x15   : > { %1508 = sst [smem:[#allocation14_spill]] %s1560_s28  ;;  %p1149_p4 = scmp.eq.s32.totalorder %s1484_s29, 0 }
  0x16   : > { %s1155_s7 = ssub.s32 %s1010_s24, %s1560_s28  ;;  %p59_p5 = por %p1488_p2, %p57_p1 }
  0x17   : > { %s1509_s6 = scalar_select %p1149_p4, 1, 0 }
  0x18   : > { %p1161_p6 = por %p1149_p4, %p63_p3  ;;  %p1487_p7 = scmp.lt.s32.totalorder %s1022_s27, 8 }
  0x19   : > { %s169_s9 = sand.u32 1, %s994_s20   ;;  %s555_s11 = sshll.u32 %s1018_s26, 2 }
  0x1a   : > { %s1510_s8 = scalar_select %p1161_p6, 1, 0 }
  0x1b   : > { %s535_s10 = sshll.u32 %s169_s9, 4  ;;  %s179_s18 = sadd.s32 %s1010_s24, %s555_s11 }
  0x1c   : > { %s173_s5 = scalar_lea.vmem [#allocation2], %s535_s10  ;;  %s538_s29 = sshll.u32 %s179_s18, 7 }
  0x1d   : > { %s182_s4 = sshll.u32 %s173_s5, 4  ;;  %s1511_s0 = sld [smem:[#allocation18_spill]]  ;;  %s1169_s4 = int_to_ptr.vmem [resolvable:$true] %s182_s4 }
  0x1e   : > { %p1178_p8 = pnand %p1487_p7, %p59_p5  ;;  %s1182_s5 = scalar_lea.sflag [#allocation3], %s169_s9 }
  0x20   : > { %p798_p10 = pneg %p1178_p8 }
  0x23   : > { %s1174_s23 = scalar_lea.hbm %s1511_s0, %s538_s29  ;;  %s801_s29 = scalar_lea.hbm %s1511_s0, 1024 }
  0x24   : > { %s796_s10 = scalar_lea.hbm %s1174_s23, 256  ;;  %p802_p13 = scmp.lt.u32.totalorder %s1174_s23, %s1511_s0 }
  0x25   : > { %p797_p9 = scmp.ne.s32.totalorder %s1174_s23, %s796_s10  ;;  %p803_p1 = scmp.lt.u32.totalorder %s801_s29, %s796_s10 }
  0x26   : > { %p805_p5 = scmp.lt.u32.totalorder %s796_s10, %s1174_s23 }
  0x27   : > { %p799_p11 = pnand %p798_p10, %p797_p9  ;;  %p804_p3 = por %p803_p1, %p802_p13 }
  0x29   : > { %p800_p12 = pneg %p799_p11  ;;  %p806_p7 = por %p805_p5, %p804_p3 }
  0x2b   : > { %p807_p2 = pnand %p806_p7, %p800_p12 }
  0x2d   : > { %810 = shalt.err (!%p807_p2)
}
  0x2e   : > { %s811_s9 = scalar_lea.vmem %s1169_s4, 256  ;;  %s1024_s3 = smov [#allocation2]  }
  0x2f   : > { %p812_p9 = scmp.ne.s32.totalorder %s1169_s4, %s811_s9  ;;  %s816_s28 = sshll.u32 %s1024_s3, 4  ;;  %s817_s28 = int_to_ptr.vmem [resolvable:$false] %s816_s28 }
  0x30   : > { %s818_s11 = scalar_lea.vmem %s817_s28, 512  ;;  %p819_p4 = scmp.lt.s32.totalorder %s1169_s4, %s817_s28 }
  0x31   : > { %p814_p11 = pnand %p812_p9, %p798_p10  ;;  %p820_p13 = scmp.lt.s32.totalorder %s818_s11, %s811_s9 }
  0x33   : > { %p815_p6 = pneg %p814_p11  ;;  %p821_p1 = por %p820_p13, %p819_p4 }
  0x35   : > { %p822_p3 = pnand %p821_p1, %p815_p6 }
  0x37   : > { %825 = shalt.err (!%p822_p3)
}
  0x38   : > { %s1491_s10 = smov 256   ;;  %s1492_s29 = smov 128  }
  0x39   : > { %s1493_s18 = smov 8   ;;  %p543_p2 = scmp.ge.s32.totalorder %s1022_s27, 1 }
  0x3a   : > { %652 = dma.hbm_to_vmem [thread:$0]  (!%p1178_p8), %s1174_s23, 256, %s1169_s4, %s1182_s5, %s1491_s10, %s1492_s29, %s1493_s18  }
  0x3b   : > { %p219_p4 = scmp.lt.s32.totalorder %s1022_s27, 9  ;;  %s1513_s9 = sadd.s32 4294967295, %s1022_s27  }
  0x3c   : > { %p1217_p6 = scmp.eq.s32.totalorder %s1513_s9, 7  ;;  %s532_s21 = sadd.s32 4294967294, %s1022_s27  }
  0x3d   : > { %p1221_p7 = pnand %p543_p2, %p219_p4  ;;  %s37_s11 = sadd.s32 1, %s1014_s25 }
  0x3e   : > { %s1562_s11 = smov (!%p1133_p0, %s37_s11), %s1014_s25  ;;  %s78_s23 = sadd.s32 1, %s982_s17 }
  0x3f   : > { %p91_p8 = scmp.ne.s32.totalorder %s978_s16, %s974_s15  ;;  %p39_p10 = scmp.ge.s32.totalorder %s1562_s11, 2 }
  0x40   : > { %p85_p12 = scmp.ne.s32.totalorder %s982_s17, %s978_s16  ;;  %p1516_p5 = scmp.ne.s32.totalorder %s1509_s6, 0 }
  0x41   : > { %s132_s5 = sadd.s32 1, %s970_s14  ;;  %s1564_s11 = smov (%p39_p10, %s1562_s11), 0 }
  0x42   : > { %p1237_p9 = por %p91_p8, %p1516_p5  ;;  %1518 = sst [smem:[#allocation15_spill]] %s1564_s11 }
  0x43   : > { %s1519_s9 = sadd.s32 1, %s1018_s26  ;;  %s74_s30 = ssub.s32 %s1014_s25, %s1564_s11 }
  0x44   : > { %s1517_s4 = scalar_select %p1237_p9, 1, 0 }
  0x45   : > { %s1566_s9 = smov (!%p39_p10, %s1519_s9), %s1018_s26  ;;  %p142_p0 = scmp.ne.s32.totalorder %s970_s14, %s966_s13 }
  0x46   : > { %p43_p11 = scmp.ge.s32.totalorder %s1566_s9, 2  ;;  %s75_s15 = sor.u32 %s74_s30, %s1155_s7 }
  0x47   : > { %p76_p13 = scmp.eq.s32.totalorder %s75_s15, 0  ;;  %p1254_p1 = por %p1217_p6, %p142_p0 }
  0x48   : > { %s1568_s9 = smov (%p43_p11, %s1566_s9), 0  ;;  %p148_p3 = scmp.ne.s32.totalorder %s966_s13, %s962_s12 }
  0x49   : > { %s1520_s6 = scalar_select %p1254_p1, 1, 0 }
  0x4a   : > { %1522 = sst [smem:[#allocation17_spill]] %s1568_s9  ;;  %s45_s29 = ssub.s32 %s1018_s26, %s1568_s9 }
  0x4b   : > { %1521 = sst [smem:[#allocation16_spill]] %s1520_s6  ;;  %s47_s18 = sor.u32 %s1155_s7, %s45_s29 }
  0x4c   : > { %s1261_s10 = scalar_select %p76_p13, %s982_s17, %s78_s23  }
  0x4d   : > { %s129_s0 = sor.u32 %s74_s30, %s45_s29  ;;  %p48_p2 = scmp.eq.s32.totalorder %s47_s18, 0 }
  0x4e   : > { %p130_p4 = scmp.eq.s32.totalorder %s129_s0, 0  ;;  %p149_p8 = scmp.eq.s32.totalorder %s532_s21, 7 }
  0x4f   : > { %s192_s3 = sand.u32 1, %s982_s17   ;;  %s1523_s15 = sadd.s32 1, %s994_s20 }
  0x50   : > { %s1272_s11 = scalar_select %p48_p2, %s994_s20, %s1523_s15  }
  0x51   : > { %s1275_s6 = scalar_select %p130_p4, %s970_s14, %s132_s5  }
  0x52   : > { %p1524_p6 = scmp.eq.s32.totalorder %s1022_s27, 0  ;;  %p1282_p5 = por %p149_p8, %p148_p3 }
  0x53   : > { %s539_s9 = sshll.u32 %s192_s3, 7  ;;  %s556_s7 = sshll.u32 %s1010_s24, 5 }
  0x54   : > { %p87_p10 = por %p85_p12, %p1524_p6  ;;  %s202_s29 = sadd.s32 %s1014_s25, %s556_s7 }
  0x55   : > { %s1525_s23 = scalar_select %p1282_p5, 1, 0 }
  0x56   : > { %s542_s18 = sshll.u32 %s202_s29, 7  ;;  %s196_s30 = scalar_lea.vmem [#allocation5], %s539_s9 }
  0x57   : > { %s205_s0 = sshll.u32 %s196_s30, 4  ;;  %s1291_s15 = scalar_lea.hbm %s1481_s1, %s542_s18  ;;  %s1293_s0 = int_to_ptr.vmem [resolvable:$true] %s205_s0 }
  0x58   : > { %p1526_p12 = scmp.lt.s32.totalorder %s1022_s27, 8  ;;  %s1301_s9 = scalar_lea.sflag [#allocation6], %s192_s3 }
  0x59   : > { %s826_s7 = scalar_lea.hbm %s1291_s15, 2048  ;;  %s831_s18 = scalar_lea.hbm %s1481_s1, 8192 }
  0x5a   : > { %p1297_p0 = pnand %p1526_p12, %p87_p10  ;;  %p827_p11 = scmp.ne.s32.totalorder %s1291_s15, %s826_s7 }
  0x5b   : > { %p832_p4 = scmp.lt.u32.totalorder %s1291_s15, %s1481_s1  ;;  %p833_p8 = scmp.lt.u32.totalorder %s831_s18, %s826_s7 }
  0x5c   : > { %p828_p13 = pneg %p1297_p0  ;;  %p835_p10 = scmp.lt.u32.totalorder %s826_s7, %s1291_s15 }
  0x5d   : > { %p834_p6 = por %p833_p8, %p832_p4 }
  0x5e   : > { %p829_p3 = pnand %p828_p13, %p827_p11 }
  0x5f   : > { %p836_p12 = por %p835_p10, %p834_p6 }
  0x60   : > { %p830_p2 = pneg %p829_p3 }
  0x62   : > { %p837_p5 = pnand %p836_p12, %p830_p2 }
  0x64   : > { %840 = shalt.err (!%p837_p5)
}
  0x65   : > { %s841_s3 = scalar_lea.vmem %s1293_s0, 2048  ;;  %s1028_s26 = smov [#allocation5]  }
  0x66   : > { %p842_p11 = scmp.ne.s32.totalorder %s1293_s0, %s841_s3  ;;  %s846_s29 = sshll.u32 %s1028_s26, 4  ;;  %s847_s29 = int_to_ptr.vmem [resolvable:$false] %s846_s29 }
  0x67   : > { %s848_s30 = scalar_lea.vmem %s847_s29, 4096  ;;  %p849_p9 = scmp.lt.s32.totalorder %s1293_s0, %s847_s29 }
  0x68   : > { %p844_p3 = pnand %p842_p11, %p828_p13  ;;  %p850_p4 = scmp.lt.s32.totalorder %s848_s30, %s841_s3 }
  0x6a   : > { %p845_p1 = pneg %p844_p3  ;;  %p851_p8 = por %p850_p4, %p849_p9 }
  0x6c   : > { %p852_p6 = pnand %p851_p8, %p845_p1 }
  0x6e   : > { %855 = shalt.err (!%p852_p6)
}
  0x6f   : > { %s1528_s7 = smov 8   ;;  %s1529_s18 = smov 128  }
  0x70   : > { %s1530_s21 = smov 256   ;;  %223 = sbr.rel (%p1221_p7) target bundleno = 406 (0x196), region = 32 }
  0x71   : > { %655 = dma.hbm_to_vmem [thread:$0]  (!%p1297_p0), %s1291_s15, 2048, %s1293_s0, %s1301_s9, %s1530_s21, %s1529_s18, %s1528_s7  }
  0x72   : > { %s225_s26 = sand.u32 (!%p1221_p7), 1, %s990_s19   ;;  %p1531_p9 = scmp.ne.s32.totalorder (!%p1221_p7), %s1510_s8, 0 }
  0x73   : > { %s1335_s29 = sshll.u32 (!%p1221_p7), %s225_s26, 4  ;;  %s226_s3 = scalar_lea.sflag (!%p1221_p7), [#allocation3], %s225_s26 }
  0x74   : > { %s229_s30 = scalar_lea.vmem (!%p1221_p7), [#allocation2], %s1335_s29 }
  0x77   : > { %949 = dma.done.wait (%p1531_p9), %s226_s3, 256  }
  0x78   : > { %951 = vsyncadd (%p1531_p9), %s226_s3, 4294967040  ;;  %s234_s5 = sand.u32 1, %s978_s16   ;;  %p1532_p7 = scmp.ne.s32.totalorder %s1517_s4, 0 }
  0x79   : > { %s545_s0 = sshll.u32 %s234_s5, 7  ;;  %s235_s15 = scalar_lea.sflag [#allocation6], %s234_s5 }
  0x7a   : > { %s1343_s28 = scalar_lea.vmem [#allocation5], %s545_s0 }
  0x7b   : > { %953 = dma.done.wait (%p1532_p7), %s235_s15, 2048  }
  0x7c   : > { %955 = vsyncadd (%p1532_p7), %s235_s15, 4294965248  ;;  %s1501_s9 = sand.u32 1, %s966_s13   ;;  %p271_p1 = scmp.lt.s32.totalorder %s1002_s22, 1 }
  0x7d   : > { %s546_s8 = sshll.u32 %s1501_s9, 4  ;;  %s1533_s5 = sld [smem:[#allocation11_spill]] }
  0x7e   : > { %s272_s7 = scalar_select %p271_p1, %s1002_s22, 1 }
  0x7f   : > { %s1357_s3 = scalar_lea.vmem [#allocation7], %s546_s8 }
  0x80   : > { %s273_s26 = scalar_lea.vmem %s1482_s2, %s272_s7 }
  0x83   : > { %p547_p5 = scmp.ne.s32.totalorder %s1533_s5, 0 }
  0x84   : > { %v548_v0 = vld [vmem:[%s273_s26] ss:$0 sm:$0xff] (!%p547_p5) }
  0x85   : > { %278 = sbr.rel (%p547_p5) target bundleno = 140 (0x8c), region = 44  ;;  %286 = vst [vmem:[%s1357_s3] sm:$0xff] (!%p547_p5), %v548_v0  ;;  %287 = vst [vmem:[%s1357_s3 + $0x8] sm:$0xff] (!%p547_p5), %v548_v0 }
  0x8c PF: > { %v292_v1 = vld [vmem:[%s1343_s28] sm:$0xff]  ;;  %v293_v2 = vld [vmem:[%s1343_s28 + $0x8] sm:$0xff]  ;;  %v294_v3 = vld [vmem:[%s1343_s28 + $0x10] sm:$0xff]  ;;  %s1534_s4 = sld [smem:[#allocation12_spill]]  ;;  %s1535_s8 = sld [smem:[#allocation16_spill]] }
  0x8d   : > { %v611_v4 = vpack.c.bf16 %v293_v2, %v292_v1  ;;  %v295_v5 = vld [vmem:[%s1343_s28 + $0x18] sm:$0xff]  ;;  %v296_v7 = vld [vmem:[%s1343_s28 + $0x20] sm:$0xff]  ;;  %v297_v8 = vld [vmem:[%s1343_s28 + $0x28] sm:$0xff]  ;;  %s403_s18 = sshll.u32 %s1357_s3, 4  ;;  %s1536_s26 = sld [smem:[#allocation19_spill]]  ;;  %s1392_s18 = int_to_ptr.vmem [resolvable:$true] %s403_s18 }
  0x8e   : > { %v615_v6 = vpack.c.bf16 %v295_v5, %v294_v3  ;;  %v619_v9 = vpack.c.bf16 %v297_v8, %v296_v7  ;;  %v290_v10 = vld [vmem:[%s229_s30] sm:$0xff]  ;;  %v299_v12 = vld [vmem:[%s1343_s28 + $0x38] sm:$0xff]  ;;  %v301_v15 = vld [vmem:[%s1343_s28 + $0x48] sm:$0xff] }
  0x8f   : > { %612 = vmatprep.subr.bf16.mxu0 %v611_v4  ;;  %v298_v11 = vld [vmem:[%s1343_s28 + $0x30] sm:$0xff]  ;;  %608 = vmatprep.mubr.f32.mxu0 %v290_v10  ;;  %v300_v14 = vld [vmem:[%s1343_s28 + $0x40] sm:$0xff]  ;;  %v303_v18 = vld [vmem:[%s1343_s28 + $0x58] sm:$0xff] }
  0x90   : > { %614 = vmatpush3.bf16.msra.mxu0 %v611_v4  ;;  %v623_v13 = vpack.c.bf16 %v299_v12, %v298_v11  ;;  %v627_v16 = vpack.c.bf16 %v301_v15, %v300_v14  ;;  %v302_v17 = vld [vmem:[%s1343_s28 + $0x50] sm:$0xff]  ;;  %v304_v20 = vld [vmem:[%s1343_s28 + $0x60] sm:$0xff]  ;;  %v305_v21 = vld [vmem:[%s1343_s28 + $0x68] sm:$0xff] }
  0x91   : > { %616 = vmatprep.subr.bf16.mxu0 %v615_v6  ;;  %v631_v19 = vpack.c.bf16 %v303_v18, %v302_v17  ;;  %v635_v22 = vpack.c.bf16 %v305_v21, %v304_v20  ;;  %v306_v23 = vld [vmem:[%s1343_s28 + $0x70] sm:$0xff]  ;;  %v307_v24 = vld [vmem:[%s1343_s28 + $0x78] sm:$0xff] }
  0x92   : > { %v639_v25 = vpack.c.bf16 %v307_v24, %v306_v23  ;;  %v291_v26 = vld [vmem:[%s229_s30 + $0x8] sm:$0xff]  ;;  %s557_s0 = sshll.u32 %s1534_s4, 2  ;;  %v288_v28 = vld [vmem:[%s1357_s3] sm:$0xff]  ;;  %s856_s30 = scalar_lea.vmem %s1392_s18, 256 }
  0x93   : > { %s400_s15 = sadd.s32 %s1002_s22, %s557_s0  ;;  %v289_v27 = vld [vmem:[%s1357_s3 + $0x8] sm:$0xff]  ;;  %s1537_s5 = smov %s1536_s26 }
  0x94   : > { %618 = vmatpush3.bf16.msra.mxu0 %v615_v6  ;;  %s552_s7 = sshll.u32 %s400_s15, 7  ;;  %s1538_s22 = sand.u32 1, %s966_s13  }
  0x95   : > { %620 = vmatprep.subr.bf16.mxu0 %v619_v9  ;;  %s1390_s9 = scalar_lea.hbm %s1536_s26, %s552_s7  ;;  %s1398_s29 = scalar_lea.sflag [#allocation4], %s1538_s22 }
  0x96   : > { %p857_p0 = scmp.ne.s32.totalorder %s1392_s18, %s856_s30  ;;  %p1539_p13 = scmp.ne.s32.totalorder %s1535_s8, 0 }
  0x97   : > { %s1029_s4 = smov [#allocation7]  }
  0x98   : > { %622 = vmatpush3.bf16.msra.mxu0 %v619_v9  ;;  %p858_p2 = pnand %p857_p0, %p1539_p13  ;;  %s860_s0 = sshll.u32 %s1029_s4, 4  ;;  %s861_s0 = int_to_ptr.vmem [resolvable:$false] %s860_s0 }
  0x99   : > { %624 = vmatprep.subr.bf16.mxu0 %v623_v13  ;;  %s862_s15 = scalar_lea.vmem %s861_s0, 512  ;;  %p863_p12 = scmp.lt.s32.totalorder %s1392_s18, %s861_s0 }
  0x9a   : > { %p859_p10 = pneg %p858_p2  ;;  %p864_p11 = scmp.lt.s32.totalorder %s862_s15, %s856_s30 }
  0x9c   : > { %626 = vmatpush3.bf16.msra.mxu0 %v623_v13  ;;  %p865_p3 = por %p864_p11, %p863_p12 }
  0x9d   : > { %628 = vmatprep.subr.bf16.mxu0 %v627_v16 }
  0x9e   : > { %p866_p4 = pnand %p865_p3, %p859_p10 }
  0xa0   : > { %630 = vmatpush3.bf16.msra.mxu0 %v627_v16 }
  0xa1   : > { %632 = vmatprep.subr.bf16.mxu0 %v631_v19 }
  0xa4   : > { %634 = vmatpush3.bf16.msra.mxu0 %v631_v19 }
  0xa5   : > { %636 = vmatprep.subr.bf16.mxu0 %v635_v22 }
  0xa8   : > { %638 = vmatpush3.bf16.msra.mxu0 %v635_v22 }
  0xa9   : > { %640 = vmatprep.subr.bf16.mxu0 %v639_v25 }
  0xac   : > { %642 = vmatpush3.bf16.msra.mxu0 %v639_v25 }
  0xaf   : > { %609 = vmatmul.mubr.f32.vlgmr.msra.gmra.mrb[0].mxu0 %v291_v26 }
 0x182   : > { %v610_v29 = vpop.f32.mrb[0].mxu0 }
 0x183   : > { %v384_v30 = vadd.f32 %v610_v29, %v289_v27  ;;  %v374_v31 = vpop.f32.mrb[1].mxu0 }
 0x184   : > { %v383_v32 = vadd.f32 %v374_v31, %v288_v28 }
 0x185   : > { %386 = vst [vmem:[%s1357_s3 + $0x8] sm:$0xff] %v384_v30 }
 0x186   : > { %385 = vst [vmem:[%s1357_s3] sm:$0xff] %v383_v32 }
 0x187   : > { %869 = shalt.err (!%p866_p4)
}
 0x188   : > { %s870_s3 = scalar_lea.hbm %s1390_s9, 256  ;;  %s874_s21 = scalar_lea.hbm %s1537_s5, 1024 }
 0x189   : > { %p871_p8 = scmp.ne.s32.totalorder %s1390_s9, %s870_s3  ;;  %p875_p7 = scmp.lt.u32.totalorder %s1390_s9, %s1537_s5 }
 0x18a   : > { %p876_p1 = scmp.lt.u32.totalorder %s874_s21, %s870_s3  ;;  %p878_p0 = scmp.lt.u32.totalorder %s870_s3, %s1390_s9 }
 0x18b   : > { %p872_p6 = pnand %p871_p8, %p1539_p13 }
 0x18c   : > { %p877_p5 = por %p876_p1, %p875_p7 }
 0x18d   : > { %p873_p9 = pneg %p872_p6 }
 0x18e   : > { %p879_p2 = por %p878_p0, %p877_p5 }
 0x190   : > { %p880_p10 = pnand %p879_p2, %p873_p9 }
 0x192   : > { %883 = shalt.err (!%p880_p10)
}
 0x193   : > { %s1030_s30 = smov 128   ;;  %s1031_s4 = smov 256  }
 0x194   : > { %s1032_s0 = smov 8  }
 0x195   : > { %647 = dma.vmem_to_hbm [thread:$0]  (%p1539_p13), %s1392_s18, 256, %s1390_s9, %s1398_s29, %s1030_s30, %s1031_s4, %s1032_s0  }
 0x196 PF: > { %p661_p12 = scmp.ge.s32.totalorder %s1022_s27, 2  ;;  %s418_s15 = sand.u32 1, %s962_s12  }
 0x197   : > { %p1540_p11 = scmp.ne.s32.totalorder %s1525_s23, 0  ;;  %s419_s3 = scalar_lea.sflag [#allocation4], %s418_s15 }
 0x199   : > { %p657_p3 = pnand %p661_p12, %p1540_p11 }
 0x19b   : > { %957 = dma.done.wait (!%p657_p3), %s419_s3, 256  }
 0x19c   : > { %959 = vsyncadd (!%p657_p3), %s419_s3, 4294967040  ;;  %s22_s27 = sadd.s32 1, %s1022_s27   ;;  %s1542_s23 = sld [smem:[#allocation13_spill]] }
 0x19d   : > { %p1427_p4 = scmp.ge.s32.totalorder %s22_s27, 10   ;;  %s1543_s9 = sld [smem:[#allocation14_spill]] }
 0x19e   : > { %s1544_s8 = sld [smem:[#allocation15_spill]]  ;;  %s1545_s26 = sld [smem:[#allocation17_spill]] }
 0x19f   : > { %s1546_s12 = smov %s966_s13  ;;  %s1547_s13 = smov %s970_s14 }
 0x1a0   : > { %s1548_s14 = smov %s1275_s6  ;;  %s1549_s15 = smov %s978_s16 }
 0x1a1   : > { %s1550_s16 = smov %s982_s17  ;;  %s1551_s17 = smov %s1261_s10 }
 0x1a2   : > { %s1552_s18 = smov %s990_s19  ;;  %s1553_s19 = smov %s994_s20 }
 0x1a3   : > { %s1554_s20 = smov %s1272_s11  ;;  %s1555_s21 = smov %s1010_s24 }
 0x1a4   : > { %s1556_s22 = smov %s1014_s25  ;;  %s1557_s24 = smov %s1543_s9 }
 0x1a5   : > { %s1558_s25 = smov %s1544_s8  ;;  %21 = sbr.rel (!%p1427_p4) target bundleno = 16 (0x10), region = 97 }
 0x1ac   :  { %424 = vsyncpa [#allocation3], 1 }
 0x1ad   :  { %426 = vsyncpa [#allocation3 + $0x1], 1 }
 0x1ae   :  { %427 = vsyncpa [#allocation6], 1 }
 0x1af   :  { %429 = vsyncpa [#allocation6 + $0x1], 1 }
 0x1b0   :  { %430 = vsyncpa [#allocation4], 1 }
 0x1b1   :  { %432 = vsyncpa [#allocation4 + $0x1], 1 }

</bundles_post_ra>
